<compile_context>
chip_gen: v5e
topology: v5e:2x2
jax: 0.10.0
libtpu: 0.0.40
codegen_flags: <defaults>
</compile_context>

<pallas_src>
import functools

import jax
import jax.numpy as jnp
from jax.experimental import pallas as pl
from jax.experimental.pallas import tpu as pltpu

LANE = 128            # TPU lane width; hidden feature padding
OUT_PAD = 8           # padded output width (>= real out_dim, one sublane row)
MXU_DTYPE = jnp.bfloat16


def _round_up(n, m):
    return ((n + m - 1) // m) * m


def mlp_kernel(x_ref, w1_ref, b1_ref, w2_ref, b2_ref, w3_ref, b3_ref, o_ref):
    # Cast the f32 activation stream to bf16 in-kernel (hidden under the DMA).
    x = x_ref[...].astype(w1_ref.dtype)

    # Layer 1: dense(32 -> 64, padded to 128) + ReLU.  bf16 MXU, f32 accumulate.
    h1 = jnp.dot(x, w1_ref[...], preferred_element_type=jnp.float32)
    h1 = jnp.maximum(h1 + b1_ref[...], 0.0)          # padded lanes stay exactly 0

    # Dropout(0.5): identity in eval / inference mode.

    # Layer 2: dense(64 -> 32, padded to 128) + ReLU.
    h2 = jnp.dot(h1.astype(w2_ref.dtype), w2_ref[...],
                 preferred_element_type=jnp.float32)
    h2 = jnp.maximum(h2 + b2_ref[...], 0.0)          # padded lanes stay exactly 0

    # Layer 3: dense(32 -> 1, padded only to 8) + Sigmoid.  Narrow output:
    # bias + sigmoid run on just 8 lanes and only 32 B/row go back to HBM.
    h3 = jnp.dot(h2.astype(w3_ref.dtype), w3_ref[...],
                 preferred_element_type=jnp.float32)
    o_ref[...] = jax.nn.sigmoid(h3 + b3_ref[...])


def prepare_params(w1, b1, w2, b2, w3, b3, mxu_dtype=MXU_DTYPE):
    """Zero-pad weights/biases to TPU-friendly widths and cast matmul operands
    to the MXU dtype.  Done once, outside the kernel.
      w1: (in, 64)  -> (in, 128)     w2: (64, 32) -> (128, 128)
      w3: (32, out) -> (128, 8)      biases padded to matching widths (f32).
    """
    def pad2d(a, rows, cols):
        out = jnp.zeros((rows, cols), a.dtype)
        return out.at[: a.shape[0], : a.shape[1]].set(a)

    w1_p = pad2d(w1, w1.shape[0], LANE).astype(mxu_dtype)     # (32, 128)
    w2_p = pad2d(w2, LANE, LANE).astype(mxu_dtype)            # (128, 128)
    w3_p = pad2d(w3, LANE, OUT_PAD).astype(mxu_dtype)         # (128, 8)
    b1_p = pad2d(b1, 1, LANE).astype(jnp.float32)             # (1, 128)
    b2_p = pad2d(b2, 1, LANE).astype(jnp.float32)             # (1, 128)
    b3_p = pad2d(b3, 1, OUT_PAD).astype(jnp.float32)          # (1, 8)
    return w1_p, b1_p, w2_p, b2_p, w3_p, b3_p


@functools.partial(jax.jit, static_argnames=("tile_b", "out_dim"))
def mlp_forward(x, w1_p, b1_p, w2_p, b2_p, w3_p, b3_p, *, tile_b=1024, out_dim=1):
    """Fused 3-layer MLP forward via a single batch-tiled pallas_call."""
    B, in_dim = x.shape
    out_pad = w3_p.shape[1]

    # Tile sizing: multiple of 8 sublanes; keep >= 2 grid steps when the batch
    # allows it so the "parallel" axis actually shards across v7x's two cores.
    tile_b = max(8, _round_up(tile_b, 8))
    if B >= 16:
        tile_b = min(tile_b, _round_up(-(-B // 2), 8))
    else:
        tile_b = min(tile_b, _round_up(B, 8))
    grid = (pl.cdiv(B, tile_b),)

    # Advisory cost estimate (memory-bound kernel; flops are nominal).
    weight_bytes = sum(int(a.size) * a.dtype.itemsize
                       for a in (w1_p, b1_p, w2_p, b2_p, w3_p, b3_p))
    cost = pl.CostEstimate(
        flops=2 * B * (in_dim * w1_p.shape[1]
                       + w2_p.shape[0] * w2_p.shape[1]
                       + w3_p.shape[0] * w3_p.shape[1]),
        transcendentals=B * out_pad,
        bytes_accessed=B * (in_dim * x.dtype.itemsize + out_pad * 4) + weight_bytes,
    )

    out = pl.pallas_call(
        mlp_kernel,
        out_shape=jax.ShapeDtypeStruct((B, out_pad), jnp.float32),
        grid_spec=pltpu.PrefetchScalarGridSpec(
            num_scalar_prefetch=0,
            grid=grid,
            in_specs=[
                # Activation stream: tiled along the batch grid axis, original
                # f32 layout (no wrapper-side cast/pad passes over HBM).
                pl.BlockSpec((tile_b, in_dim), lambda i: (i, 0)),
                # Weights / biases: block 0 for every step -> VMEM-resident.
                pl.BlockSpec(w1_p.shape, lambda i: (0, 0)),
                pl.BlockSpec(b1_p.shape, lambda i: (0, 0)),
                pl.BlockSpec(w2_p.shape, lambda i: (0, 0)),
                pl.BlockSpec(b2_p.shape, lambda i: (0, 0)),
                pl.BlockSpec(w3_p.shape, lambda i: (0, 0)),
                pl.BlockSpec(b3_p.shape, lambda i: (0, 0)),
            ],
            out_specs=pl.BlockSpec((tile_b, out_pad), lambda i: (i, 0)),
        ),
        compiler_params=pltpu.CompilerParams(
            dimension_semantics=("parallel",)),
        cost_estimate=cost,
    )(x, w1_p, b1_p, w2_p, b2_p, w3_p, b3_p)

    # Drop the (small) zero-padded output columns; batch is already exact.
    return out[:, :out_dim]


def ref_forward(x, w1, b1, w2, b2, w3, b3, mxu_dtype=MXU_DTYPE):
    """Pure-JAX reference with the same bf16-around-the-dots numerics."""
    h = jnp.dot(x.astype(mxu_dtype), w1.astype(mxu_dtype),
                preferred_element_type=jnp.float32)
    h = jnp.maximum(h + b1, 0.0)
    h = jnp.dot(h.astype(mxu_dtype), w2.astype(mxu_dtype),
                preferred_element_type=jnp.float32)
    h = jnp.maximum(h + b2, 0.0)
    h = jnp.dot(h.astype(mxu_dtype), w3.astype(mxu_dtype),
                preferred_element_type=jnp.float32)
    return jax.nn.sigmoid(h + b3)


def mlp_apply(x, raw_params, padded_params, *, min_pallas_batch=2048, tile_b=1024):
    """Dispatcher: tiny batches are launch-overhead dominated -> plain XLA path;
    large batches go through the batch-tiled Pallas kernel."""
    if x.shape[0] >= min_pallas_batch:
        return mlp_forward(x, *padded_params, tile_b=tile_b,
                           out_dim=raw_params[4].shape[1])
    return ref_forward(x, *raw_params)


def init_linear(key, in_dim, out_dim):
    """Deterministic init mimicking nn.Linear's uniform(-1/sqrt(in), 1/sqrt(in)).
    Weight returned already transposed to [in_dim, out_dim]."""
    kw, kb = jax.random.split(key)
    bound = 1.0 / (in_dim ** 0.5)
    w = jax.random.uniform(kw, (in_dim, out_dim), jnp.float32, -bound, bound)
    b = jax.random.uniform(kb, (1, out_dim), jnp.float32, -bound, bound)
    return w, b


if __name__ == "__main__":
    key = jax.random.PRNGKey(0)
    k_x, k1, k2, k3 = jax.random.split(key, 4)

    batch, input_size, h1_dim, h2_dim, out_dim = 20, 32, 64, 32, 1

    x = jax.random.normal(k_x, (batch, input_size), jnp.float32)
    w1, b1 = init_linear(k1, input_size, h1_dim)
    w2, b2 = init_linear(k2, h1_dim, h2_dim)
    w3, b3 = init_linear(k3, h2_dim, out_dim)

    padded = prepare_params(w1, b1, w2, b2, w3, b3)

    # Small tile here to exercise multiple grid steps AND the ragged last batch
    # block (20 rows, tile 8 -> grid of 3); production default is tile_b=1024.
    out = mlp_forward(x, *padded, tile_b=8, out_dim=out_dim)
    out = jax.block_until_ready(out)

    # Reference with matching bf16-matmul numerics.
    ref = ref_forward(x, w1, b1, w2, b2, w3, b3)
    assert out.shape == (batch, out_dim)
    assert jnp.allclose(out, ref, atol=1e-3, rtol=1e-3), "mismatch vs reference"

    print("KERNEL_OK")
</pallas_src>

<mosaic_0001>
module attributes {stable_mosaic.version = 11 : i64} {
  func.func @mlp_kernel(%arg0: i32, %arg1: memref<8x32xf32, #tpu.memory_space<vmem>>, %arg2: memref<32x128xbf16, #tpu.memory_space<vmem>>, %arg3: memref<1x128xf32, #tpu.memory_space<vmem>>, %arg4: memref<128x128xbf16, #tpu.memory_space<vmem>>, %arg5: memref<1x128xf32, #tpu.memory_space<vmem>>, %arg6: memref<128x8xbf16, #tpu.memory_space<vmem>>, %arg7: memref<1x8xf32, #tpu.memory_space<vmem>>, %arg8: memref<8x8xf32, #tpu.memory_space<vmem>>) attributes {dimension_semantics = [#tpu.dimension_semantics<parallel>], iteration_bounds = array<i64: 3>, scalar_prefetch = 0 : i64, scratch_operands = 0 : i64, tpu.core_type = #tpu.core_type<tc>, window_params = [{transform_indices = @transform_0, window_bounds = array<i64: 8, 32>}, {pipeline_mode = #tpu.pipeline_mode<synchronous>, transform_indices = @transform_1, window_bounds = array<i64: 32, 128>}, {pipeline_mode = #tpu.pipeline_mode<synchronous>, transform_indices = @transform_2, window_bounds = array<i64: 1, 128>}, {pipeline_mode = #tpu.pipeline_mode<synchronous>, transform_indices = @transform_3, window_bounds = array<i64: 128, 128>}, {pipeline_mode = #tpu.pipeline_mode<synchronous>, transform_indices = @transform_4, window_bounds = array<i64: 1, 128>}, {pipeline_mode = #tpu.pipeline_mode<synchronous>, transform_indices = @transform_5, window_bounds = array<i64: 128, 8>}, {pipeline_mode = #tpu.pipeline_mode<synchronous>, transform_indices = @transform_6, window_bounds = array<i64: 1, 8>}, {transform_indices = @transform_7, window_bounds = array<i64: 8, 8>}]} {
    %c0 = arith.constant 0 : index
    %c0_0 = arith.constant 0 : index
    %0 = vector.load %arg1[%c0, %c0_0] : memref<8x32xf32, #tpu.memory_space<vmem>>, vector<8x32xf32>
    %1 = arith.truncf %0 : vector<8x32xf32> to vector<8x32xbf16>
    %c0_1 = arith.constant 0 : index
    %c0_2 = arith.constant 0 : index
    %2 = vector.load %arg2[%c0_1, %c0_2] : memref<32x128xbf16, #tpu.memory_space<vmem>>, vector<32x128xbf16>
    %cst = arith.constant dense<0.000000e+00> : vector<8x128xf32>
    %3 = tpu.matmul %1, %2, %cst {dimension_numbers = #tpu.dot_dimension_numbers<[1], [0], [0], [1], [0, 0, 1, 1], [], []>} : vector<8x32xbf16>, vector<32x128xbf16>, vector<8x128xf32> -> vector<8x128xf32>
    %c0_3 = arith.constant 0 : index
    %c0_4 = arith.constant 0 : index
    %4 = vector.load %arg3[%c0_3, %c0_4] : memref<1x128xf32, #tpu.memory_space<vmem>>, vector<1x128xf32>
    %5 = vector.broadcast %4 : vector<1x128xf32> to vector<8x128xf32>
    %6 = arith.addf %3, %5 : vector<8x128xf32>
    %cst_5 = arith.constant 0.000000e+00 : f32
    %7 = vector.broadcast %cst_5 : f32 to vector<8x128xf32>
    %8 = arith.maximumf %6, %7 : vector<8x128xf32>
    %9 = arith.truncf %8 : vector<8x128xf32> to vector<8x128xbf16>
    %c0_6 = arith.constant 0 : index
    %c0_7 = arith.constant 0 : index
    %10 = vector.load %arg4[%c0_6, %c0_7] : memref<128x128xbf16, #tpu.memory_space<vmem>>, vector<128x128xbf16>
    %cst_8 = arith.constant dense<0.000000e+00> : vector<8x128xf32>
    %11 = tpu.matmul %9, %10, %cst_8 {dimension_numbers = #tpu.dot_dimension_numbers<[1], [0], [0], [1], [0, 0, 1, 1], [], []>} : vector<8x128xbf16>, vector<128x128xbf16>, vector<8x128xf32> -> vector<8x128xf32>
    %c0_9 = arith.constant 0 : index
    %c0_10 = arith.constant 0 : index
    %12 = vector.load %arg5[%c0_9, %c0_10] : memref<1x128xf32, #tpu.memory_space<vmem>>, vector<1x128xf32>
    %13 = vector.broadcast %12 : vector<1x128xf32> to vector<8x128xf32>
    %14 = arith.addf %11, %13 : vector<8x128xf32>
    %cst_11 = arith.constant 0.000000e+00 : f32
    %15 = vector.broadcast %cst_11 : f32 to vector<8x128xf32>
    %16 = arith.maximumf %14, %15 : vector<8x128xf32>
    %17 = arith.truncf %16 : vector<8x128xf32> to vector<8x128xbf16>
    %c0_12 = arith.constant 0 : index
    %c0_13 = arith.constant 0 : index
    %18 = vector.load %arg6[%c0_12, %c0_13] : memref<128x8xbf16, #tpu.memory_space<vmem>>, vector<128x8xbf16>
    %cst_14 = arith.constant dense<0.000000e+00> : vector<8x8xf32>
    %19 = tpu.matmul %17, %18, %cst_14 {dimension_numbers = #tpu.dot_dimension_numbers<[1], [0], [0], [1], [0, 0, 1, 1], [], []>} : vector<8x128xbf16>, vector<128x8xbf16>, vector<8x8xf32> -> vector<8x8xf32>
    %c0_15 = arith.constant 0 : index
    %c0_16 = arith.constant 0 : index
    %20 = vector.load %arg7[%c0_15, %c0_16] : memref<1x8xf32, #tpu.memory_space<vmem>>, vector<1x8xf32>
    %21 = vector.broadcast %20 : vector<1x8xf32> to vector<8x8xf32>
    %22 = arith.addf %19, %21 : vector<8x8xf32>
    %23 = arith.negf %22 : vector<8x8xf32>
    %24 = math.exp %23 : vector<8x8xf32>
    %cst_17 = arith.constant 1.000000e+00 : f32
    %25 = vector.broadcast %cst_17 : f32 to vector<8x8xf32>
    %26 = arith.addf %25, %24 : vector<8x8xf32>
    %27 = arith.divf %25, %26 : vector<8x8xf32>
    %c0_18 = arith.constant 0 : index
    %c0_19 = arith.constant 0 : index
    %28 = vector.load %arg8[%c0_18, %c0_19] : memref<8x8xf32, #tpu.memory_space<vmem>>, vector<8x8xf32>
    tpu.vector_store %arg8[%c0_18, %c0_19], %27 {strides = array<i32>} : memref<8x8xf32, #tpu.memory_space<vmem>>, vector<8x8xf32>,
    return
  }
  func.func @transform_0(%arg0: i32) -> (i32, i32) {
    %c0_i32 = arith.constant 0 : i32
    %c0_i32_0 = arith.constant 0 : i32
    return %arg0, %c0_i32 : i32, i32
  }
  func.func @transform_1(%arg0: i32) -> (i32, i32) {
    %c0_i32 = arith.constant 0 : i32
    %c0_i32_0 = arith.constant 0 : i32
    %c0_i32_1 = arith.constant 0 : i32
    return %c0_i32, %c0_i32_0 : i32, i32
  }
  func.func @transform_2(%arg0: i32) -> (i32, i32) {
    %c0_i32 = arith.constant 0 : i32
    %c0_i32_0 = arith.constant 0 : i32
    %c0_i32_1 = arith.constant 0 : i32
    return %c0_i32, %c0_i32_0 : i32, i32
  }
  func.func @transform_3(%arg0: i32) -> (i32, i32) {
    %c0_i32 = arith.constant 0 : i32
    %c0_i32_0 = arith.constant 0 : i32
    %c0_i32_1 = arith.constant 0 : i32
    return %c0_i32, %c0_i32_0 : i32, i32
  }
  func.func @transform_4(%arg0: i32) -> (i32, i32) {
    %c0_i32 = arith.constant 0 : i32
    %c0_i32_0 = arith.constant 0 : i32
    %c0_i32_1 = arith.constant 0 : i32
    return %c0_i32, %c0_i32_0 : i32, i32
  }
  func.func @transform_5(%arg0: i32) -> (i32, i32) {
    %c0_i32 = arith.constant 0 : i32
    %c0_i32_0 = arith.constant 0 : i32
    %c0_i32_1 = arith.constant 0 : i32
    return %c0_i32, %c0_i32_0 : i32, i32
  }
  func.func @transform_6(%arg0: i32) -> (i32, i32) {
    %c0_i32 = arith.constant 0 : i32
    %c0_i32_0 = arith.constant 0 : i32
    %c0_i32_1 = arith.constant 0 : i32
    return %c0_i32, %c0_i32_0 : i32, i32
  }
  func.func @transform_7(%arg0: i32) -> (i32, i32) {
    %c0_i32 = arith.constant 0 : i32
    %c0_i32_0 = arith.constant 0 : i32
    return %arg0, %c0_i32 : i32, i32
  }
}

</mosaic_0001>

<bundles_post_ra>
// kernel: mlp_forward.1
= control target key start
LH: loop header
LB: loop body
LE: loop exit
PB: predicated region body
PF: predicated region fallthrough
CT: control target
= control target key end

     0   :  { %12 = vsyncpa [#allocation3], 0  ;;  %s1081_s0 = inlined_call_operand.hbm [shape: f32[20,32], index: 0, kind: input, shape index: {}]   ;;  %s1082_s1 = inlined_call_operand.hbm [shape: bf16[32,128], index: 1, kind: input, shape index: {}]   ;;  %s1083_s2 = inlined_call_operand.vmem [shape: f32[1,128], index: 2, kind: input, shape index: {}]   ;;  %s1084_s3 = inlined_call_operand.vmem [shape: bf16[128,128], index: 3, kind: input, shape index: {}]   ;;  %s1085_s4 = inlined_call_operand.vmem [shape: f32[1,128], index: 4, kind: input, shape index: {}]   ;;  %s1086_s5 = inlined_call_operand.vmem [shape: bf16[128,8], index: 5, kind: input, shape index: {}]   ;;  %s1087_s6 = inlined_call_operand.vmem [shape: f32[1,8], index: 6, kind: input, shape index: {}]   ;;  %s1088_s7 = inlined_call_operand.vmem [shape: f32[20,8], index: 7, kind: output, shape index: {}]  }
   0x1   :  { %14 = vsyncpa [#allocation3 + $0x1], 0 }
   0x2   :  { %15 = vsyncpa [#allocation5], 0  ;;  %s921_s24 = smov 0   ;;  %s923_s25 = smov 0  }
   0x3   :  { %s925_s26 = smov 0   ;;  %s927_s27 = smov 0  }
   0x4 LB: > { %s215_s30 = sshll.u32 %s1082_s1, 4  ;;  %s943_s8 = sadd.s32 4294967295, %s876_s27   ;;  %s876_s27 = sphi %s927_s27, %s1095_s27   ;;  %s872_s26 = sphi %s925_s26, %s1094_s26   ;;  %s868_s25 = sphi %s923_s25, %s1093_s25   ;;  %s864_s24 = sphi %s921_s24, %s1092_s24   ;;  %s216_s30 = int_to_ptr.hbm [resolvable:$true] %s215_s30 }
   0x5   : > { %p616_p0 = scmp.ge.s32.totalorder %s876_s27, 1  ;;  %p42_p1 = scmp.eq.s32.totalorder %s943_s8, 0 }
   0x6   : > { %p204_p2 = scmp.lt.s32.totalorder %s876_s27, 4  ;;  %s878_s10 = smov [#allocation4]  }
   0x7   : > { %s217_s11 = sshll.u32 %s878_s10, 4  ;;  %s879_s12 = smov 64   ;;  %s218_s11 = int_to_ptr.vmem [resolvable:$true] %s217_s11 }
   0x8   : > { %p948_p3 = pnand %p616_p0, %p204_p2  ;;  %s880_s13 = smov 4  }
   0x9   : > { %s957_s14 = sadd.s32 1, %s876_s27   ;;  %s28_s16 = sadd.s32 1, %s872_s26 }
   0xa   : > { %p725_p4 = pneg %p948_p3  ;;  %s25_s15 = ssub.s32 %s876_s27, %s957_s14 }
   0xb   : > { %p26_p6 = scmp.eq.s32.totalorder %s25_s15, 0  ;;  %p35_p7 = scmp.ne.s32.totalorder %s872_s26, %s868_s25 }
   0xc   : > { %p726_p5 = pnand %p725_p4, %p42_p1  ;;  %p36_p8 = scmp.eq.s32.totalorder %s876_s27, 0 }
   0xd   : > { %p41_p9 = scmp.ne.s32.totalorder %s868_s25, %s864_s24  ;;  %p734_p12 = scmp.lt.s32.totalorder %s876_s27, 3 }
   0xe   : > { %728 = dma.hbm_to_vmem [thread:$0]  (!%p726_p5), %s216_s30, 256, %s218_s11, [#allocation5], %s879_s12, %s879_s12, %s880_s13  }
   0xf   : > { %s967_s17 = scalar_select %p26_p6, %s872_s26, %s28_s16  }
  0x10   : > { %p37_p10 = por %p36_p8, %p35_p7  ;;  %p971_p11 = por %p42_p1, %p41_p9 }
  0x11   : > { %s246_s19 = sand.u32 1, %s872_s26   ;;  %s620_s21 = sshll.u32 %s876_s27, 3 }
  0x12   : > { %s619_s20 = sshll.u32 %s246_s19, 3  ;;  %s254_s28 = scalar_lea.hbm %s1081_s0, %s620_s21 }
  0x13   : > { %s250_s29 = scalar_lea.vmem [#allocation2], %s619_s20  ;;  %s256_s10 = sshll.u32 %s254_s28, 4  ;;  %s257_s10 = int_to_ptr.hbm [resolvable:$true] %s256_s10 }
  0x14   : > { %s258_s30 = sshll.u32 %s250_s29, 4  ;;  %p981_p13 = pnand %p734_p12, %p37_p10  ;;  %s259_s30 = int_to_ptr.vmem [resolvable:$true] %s258_s30 }
  0x15   : > { %s247_s11 = scalar_lea.sflag [#allocation3], %s246_s19  ;;  %s808_s12 = sshra.s32 %s257_s10, 4  ;;  %s809_s12 = int_to_ptr.hbm [resolvable:$true] %s808_s12 }
  0x16   : > { %s810_s13 = scalar_lea.hbm %s809_s12, 8  ;;  %p812_p2 = pneg %p981_p13 }
  0x17   : > { %p811_p0 = scmp.ne.s32.totalorder %s809_s12, %s810_s13  ;;  %s815_s16 = scalar_lea.hbm %s1081_s0, 24 }
  0x18   : > { %p816_p6 = scmp.lt.s32.totalorder %s809_s12, %s1081_s0  ;;  %p817_p7 = scmp.lt.s32.totalorder %s815_s16, %s810_s13 }
  0x19   : > { %p813_p4 = pnand %p812_p2, %p811_p0 }
  0x1a   : > { %p818_p8 = por %p817_p7, %p816_p6 }
  0x1b   : > { %p814_p5 = pneg %p813_p4 }
  0x1d   : > { %p819_p9 = pnand %p818_p8, %p814_p5 }
  0x1f   : > { %822 = shalt.err (!%p819_p9)
}
  0x20   : > { %732 = dma.hbm_to_vmem [thread:$0]  (!%p981_p13), %s257_s10, 128, %s259_s30, %s247_s11  }
  0x21   : > { %267 = sbr.rel (%p948_p3) target bundleno = 476 (0x1dc), region = 48  ;;  %s269_s19 = sand.u32 (!%p948_p3), 1, %s868_s25  }
  0x22   : > { %s622_s22 = sshll.u32 (!%p948_p3), %s269_s19, 3  ;;  %s270_s23 = scalar_lea.sflag (!%p948_p3), [#allocation3], %s269_s19 }
  0x23   : > { %s273_s28 = scalar_lea.vmem (!%p948_p3), [#allocation2], %s622_s22 }
  0x26   : > { %855 = dma.done.wait (%p971_p11), %s270_s23, 128  }
  0x27   : > { %857 = vsyncadd (%p971_p11), %s270_s23, 4294967168 }
  0x28   : > { %859 = dma.done.wait (%p42_p1), [#allocation5], 256  }
  0x29   : > { %861 = vsyncadd (%p42_p1), [#allocation5], 4294967040  ;;  %v702_v0 = vld [vmem:[#allocation4 + $0x8] sm:$0xff]  ;;  %v701_v2 = vld [vmem:[#allocation4] sm:$0xff]  ;;  %vm336_vm0 = vcmask 261120   ;;  %p309_p1 = scmp.lt.s32.totalorder %s943_s8, 2 }
  0x2a   : > { %v710_v1 = vld [vmem:[%s1084_s3 + $0x38] sm:$0xff]  ;;  %346 = vmatpush.bf16.msra.mxu0 %v702_v0  ;;  %v314_v3 = vld [vmem:[%s273_s28] sm:$0xff]  ;;  %v709_v4 = vld [vmem:[%s1084_s3 + $0x30] sm:$0xff]  ;;  %vm538_vm4 = vcmask 64512  }
  0x2b   : > { %423 = vmatpush.bf16.msra.mxu1 %v710_v1  ;;  %v315_v5 = vpack.c.bf16 %v314_v3, %v314_v3  ;;  %v708_v6 = vld [vmem:[%s1084_s3 + $0x28] sm:$0xff]  ;;  %v707_v7 = vld [vmem:[%s1084_s3 + $0x20] sm:$0xff]  ;;  %v706_v8 = vld [vmem:[%s1084_s3 + $0x18] sm:$0xff]  ;;  %s1097_s8 = smov (!%p309_p1, %s943_s8), 2 }
  0x2c   : > { %v705_v9 = vld [vmem:[%s1084_s3 + $0x10] sm:$0xff]  ;;  %v704_v10 = vld [vmem:[%s1084_s3 + $0x8] sm:$0xff]  ;;  %v703_v11 = vld [vmem:[%s1084_s3] sm:$0xff]  ;;  %s624_s30 = sshll.u32 %s1097_s8, 3 }
  0x2d   : > { %v718_v12 = vld [vmem:[%s1086_s5 + $0x38] sm:$0xff]  ;;  %v717_v13 = vld [vmem:[%s1086_s5 + $0x30] sm:$0xff]  ;;  %v716_v14 = vld [vmem:[%s1086_s5 + $0x28] sm:$0xff]  ;;  %s312_s24 = scalar_lea.vmem %s1088_s7, %s624_s30 }
  0x2e   : > { %347 = vmatpush.bf16.msra.mxu0 %v701_v2  ;;  %506 = vmatpush.bf16.msra.mxu2 %v718_v12  ;;  %v715_v15 = vld [vmem:[%s1086_s5 + $0x20] sm:$0xff]  ;;  %v714_v16 = vld [vmem:[%s1086_s5 + $0x18] sm:$0xff]  ;;  %v713_v17 = vld [vmem:[%s1086_s5 + $0x10] sm:$0xff] }
  0x2f   : > { %424 = vmatpush.bf16.msra.mxu1 %v709_v4  ;;  %v771_v18 = vld [vmem:[%s1083_s2] ss:$0 sm:$0xff]  ;;  %v712_v24 = vld [vmem:[%s1086_s5 + $0x8] sm:$0xff] }
  0x30   : > { %v711_v25 = vld [vmem:[%s1086_s5] sm:$0xff] }
  0x31   : > { %633 = vmatmul.msk.bf16.vlgmr.msra.gmra.mxu0 %vm336_vm0, %v315_v5  ;;  %v772_v26 = vld [vmem:[%s1085_s4] ss:$0 sm:$0xff] }
  0x32   : > { %507 = vmatpush.bf16.msra.mxu2 %v717_v13  ;;  %v773_v32 = vld [vmem:[%s1087_s6] ss:$0 sm:$0xff] }
  0x33   : > { %425 = vmatpush.bf16.msra.mxu1 %v708_v6 }
  0x36   : > { %508 = vmatpush.bf16.msra.mxu2 %v716_v14 }
  0x37   : > { %426 = vmatpush.bf16.msra.mxu1 %v707_v7 }
  0x3a   : > { %509 = vmatpush.bf16.msra.mxu2 %v715_v15 }
  0x3b   : > { %427 = vmatpush.bf16.msra.mxu1 %v706_v8 }
  0x3e   : > { %510 = vmatpush.bf16.msra.mxu2 %v714_v16 }
  0x3f   : > { %428 = vmatpush.bf16.msra.mxu1 %v705_v9 }
  0x42   : > { %511 = vmatpush.bf16.msra.mxu2 %v713_v17 }
  0x43   : > { %429 = vmatpush.bf16.msra.mxu1 %v704_v10 }
  0x46   : > { %512 = vmatpush.bf16.msra.mxu2 %v712_v24 }
  0x47   : > { %430 = vmatpush.bf16.msra.mxu1 %v703_v11 }
  0x4a   : > { %513 = vmatpush.bf16.msra.mxu2 %v711_v25 }
  0xae   : > { %v349_v19 = vpop.f32.mrf.mxu0 }
  0xaf   : > { %v350_v20 = vadd.f32 %v771_v18, %v349_v19 }
  0xb1   : > { %v353_v21 = vmax.f32 %v350_v20, 0.0 }
  0xb3   : > { %v354_v22 = vpack.c.bf16 %v353_v21, %v353_v21 }
  0xb5   : > { %431 = vmatmul.bf16.vlgmr.msra.gmra.mxu1 %v354_v22 }
  0xb6   : > { %v351_v23 = vpop.f32.mrf.mxu0 }
 0x132   : > { %v432_v27 = vpop.f32.mrf.mxu1 }
 0x133   : > { %v433_v28 = vadd.f32 %v772_v26, %v432_v27 }
 0x135   : > { %v436_v29 = vmax.f32 %v433_v28, 0.0 }
 0x137   : > { %v437_v30 = vpack.c.bf16 %v436_v29, %v436_v29 }
 0x139   : > { %514 = vmatmul.bf16.vlgmr.msra.gmra.mxu2 %v437_v30 }
 0x13a   : > { %v434_v31 = vpop.f32.mrf.mxu1 }
 0x1bc   : > { %v515_v33 = vpop.f32.mrf.mxu2 }
 0x1bd   : > { %v516_v34 = vadd.f32 %v773_v32, %v515_v33 }
 0x1bf   : > { %v698_v35 = vmul.f32 -1.442695, %v516_v34 }
 0x1c1   : > { %774 = vpow2.f32 %v698_v35 }
 0x1c4   : > { %v517_v36 = vpop.f32.mrf.mxu2 }
 0x1c7   : > { %v775_v37 = vpop.eup %774 }
 0x1c8   : > { %v522_v38 = vadd.f32 1.0, %v775_v37 }
 0x1ca   : > { %776 = vrcp.f32 %v522_v38  ;;  %v534_v42 = vand.u32 2147483648, %v522_v38  ;;  %v532_v44 = vand.u32 2147483647, %v522_v38  ;;  %vm528_vm2 = vweird.f32 %v522_v38 }
 0x1cc   : > { %v535_v46 = vor.u32 1.1754944e-38, %v534_v42  ;;  %vm533_vm5 = vcmp.eq.f32.partialorder %v532_v44, 8.507059e+37 }
 0x1d0   : > { %v777_v39 = vpop.eup %776 }
 0x1d1   : > { %v524_v40 = vmul.f32 %v777_v39, %v522_v38  ;;  %vm529_vm1 = vweird.f32 %v777_v39 }
 0x1d2   : > { %vm530_vm3 = vmor %vm528_vm2, %vm529_vm1 }
 0x1d3   : > { %v525_v41 = vsub.f32 1.0, %v524_v40 }
 0x1d5   : > { %v526_v43 = vmul.f32 %v777_v39, %v525_v41 }
 0x1d7   : > { %v527_v45 = vadd.f32 %v777_v39, %v526_v43 }
 0x1d9   : > { %v531_v47 = vsel %vm530_vm3, %v777_v39, %v527_v45 }
 0x1da   : > { %v536_v48 = vsel %vm533_vm5, %v535_v46, %v531_v47 }
 0x1db   : > { %539 = vst.msk [vmem:[%s312_s24] sm:$0xff] %vm538_vm4, %v536_v48 }
 0x1dc PF: > { %p18_p3 = scmp.ge.s32.totalorder %s957_s14, 5   ;;  %s1092_s24 = smov %s868_s25 }
 0x1dd   : > { %s1093_s25 = smov %s872_s26  ;;  %s1094_s26 = smov %s967_s17 }
 0x1de   : > { %s1095_s27 = smov %s957_s14  ;;  %20 = sbr.rel (!%p18_p3) target bundleno = 4 (0x4), region = 92 }
 0x1e3   :  { %559 = vsyncpa [#allocation3], 1 }
 0x1e4   :  { %561 = vsyncpa [#allocation3 + $0x1], 1 }
 0x1e5   :  { %562 = vsyncpa [#allocation5], 1 }

</bundles_post_ra>
